<compile_context>
chip_gen: v6e
topology: v6e:2x2x1
jax: 0.10.0
libtpu: 0.0.40
codegen_flags: <defaults>
</compile_context>

<pallas_src>
import jax
import jax.numpy as jnp
from jax.experimental import pallas as pl
from jax.experimental.pallas import tpu as pltpu


def _etoy_stats_kernel(e_ref, sum_ref, sq_ref, mn_ref, mx_ref):
    # e_ref:   (TB, NT, F)  lane-folded edge tile
    # outputs: (TB, F)      per-lane running sum / sumsq / min / max
    k = pl.program_id(1)

    @pl.when(k == 0)
    def _init():
        sum_ref[...] = jnp.zeros_like(sum_ref)
        sq_ref[...] = jnp.zeros_like(sq_ref)
        mn_ref[...] = jnp.full_like(mn_ref, jnp.inf)
        mx_ref[...] = jnp.full_like(mx_ref, -jnp.inf)

    e = e_ref[...].astype(jnp.float32)             # (TB, NT, F)
    sum_ref[...] = sum_ref[...] + jnp.sum(e, axis=1)
    sq_ref[...] = sq_ref[...] + jnp.sum(e * e, axis=1)
    mn_ref[...] = jnp.minimum(mn_ref[...], jnp.min(e, axis=1))
    mx_ref[...] = jnp.maximum(mx_ref[...], jnp.max(e, axis=1))


def _round_up(x, m):
    return ((x + m - 1) // m) * m


def _pick_fold(nn, de, lane_cap=512):
    """Largest divisor G of nn with G*de <= lane_cap (lane-folding factor)."""
    gmax = max(1, lane_cap // max(de, 1))
    best = 1
    for g in range(1, gmax + 1):
        if nn % g == 0:
            best = g
    return best


def _pick_block(dim, cap):
    """Largest block <= cap that is either == dim or a multiple-of-8 divisor
    of dim (satisfies the (8,128) BlockSpec constraint on sublane dims)."""
    if dim <= cap:
        return dim
    best = None
    for b in range(8, cap + 1, 8):
        if dim % b == 0:
            best = b
    return best if best is not None else dim


def etoy_forward(E, W, b, *, vmem_budget_bytes=8 * 1024 * 1024):
    """E: (bs, n, n, de), W: (4*de, dy) (pre-transposed), b: (dy,) -> (bs, dy)."""
    bs, n, n2, de = E.shape
    assert n == n2, "E must be (bs, n, n, de)"
    dy = W.shape[-1]
    NN = n * n

    # Lane-dense folding: (bs, NN, de) -> (bs, R, F) with F = G*de on lanes.
    G = _pick_fold(NN, de)
    F = G * de
    R = NN // G
    e_fold = E.reshape(bs, R, F)                    # contiguous -> free reshape

    # Tile sizes.
    TB = _pick_block(bs, 256)                       # batch rows per step
    F_pad = _round_up(F, 128)
    row_bytes = TB * F_pad * 4
    max_rows = max(1, vmem_budget_bytes // (2 * row_bytes))   # 2x: double buffer
    NT = _pick_block(R, max_rows)                   # folded rows per step

    grid = (bs // TB, R // NT)
    out_shape = tuple(
        jax.ShapeDtypeStruct((bs, F), jnp.float32) for _ in range(4)
    )
    out_specs = tuple(
        pl.BlockSpec((TB, F), lambda bb, k: (bb, 0)) for _ in range(4)
    )

    sum_o, sq_o, mn_o, mx_o = pl.pallas_call(
        _etoy_stats_kernel,
        out_shape=out_shape,
        grid_spec=pltpu.PrefetchScalarGridSpec(
            num_scalar_prefetch=0,
            grid=grid,
            in_specs=[pl.BlockSpec((TB, NT, F), lambda bb, k: (bb, k, 0))],
            out_specs=out_specs,
        ),
        compiler_params=pltpu.CompilerParams(
            dimension_semantics=("parallel", "arbitrary"),
            vmem_limit_bytes=32 * 1024 * 1024,
        ),
    )(e_fold)

    # Tiny epilogue in plain XLA: collapse the G folded lane groups, finalize
    # the statistics, and apply the linear layer.  O(bs*de) work.
    s = sum_o.reshape(bs, G, de).sum(axis=1)        # (bs, de)
    sq = sq_o.reshape(bs, G, de).sum(axis=1)
    mi = mn_o.reshape(bs, G, de).min(axis=1)
    ma = mx_o.reshape(bs, G, de).max(axis=1)

    mean = s / NN
    var = (sq - s * mean) / (NN - 1)                # unbiased (torch.std default)
    var = jnp.maximum(var, 0.0)                     # clamp tiny negative residue
    std = jnp.sqrt(var)

    z = jnp.concatenate([mean, mi, ma, std], axis=-1)   # (bs, 4*de)
    return z @ W + b


def etoy_reference(E, W, b):
    """Pure-JAX reference matching the PyTorch module."""
    m = jnp.mean(E, axis=(1, 2))
    mi = jnp.min(E, axis=(1, 2))
    ma = jnp.max(E, axis=(1, 2))
    std = jnp.std(E, axis=(1, 2), ddof=1)           # unbiased like torch.std
    z = jnp.concatenate([m, mi, ma, std], axis=-1)
    return z @ W + b


if __name__ == "__main__":
    # Small shapes consistent with the module: bs=2, n=8, de=4, dy=8
    bs, n, de, dy = 2, 8, 4, 8

    key = jax.random.PRNGKey(0)
    k_e, k_w, k_b = jax.random.split(key, 3)

    E = jax.random.normal(k_e, (bs, n, n, de), dtype=jnp.float32)

    # Deterministic parameter init (mimic nn.Linear uniform(-1/sqrt(fan_in), .)).
    fan_in = 4 * de
    bound = 1.0 / (fan_in ** 0.5)
    W = jax.random.uniform(k_w, (4 * de, dy), jnp.float32, -bound, bound)  # (4*de, dy)
    b = jax.random.uniform(k_b, (dy,), jnp.float32, -bound, bound)

    out = jax.block_until_ready(etoy_forward(E, W, b))
    ref = etoy_reference(E, W, b)

    assert out.shape == (bs, dy)
    assert jnp.allclose(out, ref, rtol=1e-4, atol=1e-5), (out, ref)

    print("KERNEL_OK")
</pallas_src>

<mosaic_0001>
module attributes {stable_mosaic.version = 11 : i64} {
  func.func @_etoy_stats_kernel(%arg0: i32, %arg1: i32, %arg2: memref<2x1x256xf32, #tpu.memory_space<vmem>>, %arg3: memref<2x256xf32, #tpu.memory_space<vmem>>, %arg4: memref<2x256xf32, #tpu.memory_space<vmem>>, %arg5: memref<2x256xf32, #tpu.memory_space<vmem>>, %arg6: memref<2x256xf32, #tpu.memory_space<vmem>>) attributes {dimension_semantics = [#tpu.dimension_semantics<parallel>, #tpu.dimension_semantics<arbitrary>], iteration_bounds = array<i64: 1, 1>, scalar_prefetch = 0 : i64, scratch_operands = 0 : i64, tpu.core_type = #tpu.core_type<tc>, window_params = [{transform_indices = @transform_0, window_bounds = array<i64: 2, 1, 256>}, {transform_indices = @transform_1, window_bounds = array<i64: 2, 256>}, {transform_indices = @transform_2, window_bounds = array<i64: 2, 256>}, {transform_indices = @transform_3, window_bounds = array<i64: 2, 256>}, {transform_indices = @transform_4, window_bounds = array<i64: 2, 256>}]} {
    %c0_i32 = arith.constant 0 : i32
    %0 = arith.cmpi eq, %arg1, %c0_i32 : i32
    %1 = arith.extui %0 : i1 to i32
    %c0_i32_0 = arith.constant 0 : i32
    %2 = arith.cmpi ne, %1, %c0_i32_0 : i32
    scf.if %2 {
      %cst_22 = arith.constant 0.000000e+00 : f32
      %21 = vector.broadcast %cst_22 : f32 to vector<2x256xf32>
      %c0_23 = arith.constant 0 : index
      %c0_24 = arith.constant 0 : index
      %22 = vector.load %arg3[%c0_23, %c0_24] : memref<2x256xf32, #tpu.memory_space<vmem>>, vector<2x256xf32>
      tpu.vector_store %arg3[%c0_23, %c0_24], %21 {strides = array<i32>} : memref<2x256xf32, #tpu.memory_space<vmem>>, vector<2x256xf32>,
      %cst_25 = arith.constant 0.000000e+00 : f32
      %23 = vector.broadcast %cst_25 : f32 to vector<2x256xf32>
      %c0_26 = arith.constant 0 : index
      %c0_27 = arith.constant 0 : index
      %24 = vector.load %arg4[%c0_26, %c0_27] : memref<2x256xf32, #tpu.memory_space<vmem>>, vector<2x256xf32>
      tpu.vector_store %arg4[%c0_26, %c0_27], %23 {strides = array<i32>} : memref<2x256xf32, #tpu.memory_space<vmem>>, vector<2x256xf32>,
      %cst_28 = arith.constant 0x7F800000 : f32
      %25 = vector.broadcast %cst_28 : f32 to vector<2x256xf32>
      %c0_29 = arith.constant 0 : index
      %c0_30 = arith.constant 0 : index
      %26 = vector.load %arg5[%c0_29, %c0_30] : memref<2x256xf32, #tpu.memory_space<vmem>>, vector<2x256xf32>
      tpu.vector_store %arg5[%c0_29, %c0_30], %25 {strides = array<i32>} : memref<2x256xf32, #tpu.memory_space<vmem>>, vector<2x256xf32>,
      %cst_31 = arith.constant 0xFF800000 : f32
      %27 = vector.broadcast %cst_31 : f32 to vector<2x256xf32>
      %c0_32 = arith.constant 0 : index
      %c0_33 = arith.constant 0 : index
      %28 = vector.load %arg6[%c0_32, %c0_33] : memref<2x256xf32, #tpu.memory_space<vmem>>, vector<2x256xf32>
      tpu.vector_store %arg6[%c0_32, %c0_33], %27 {strides = array<i32>} : memref<2x256xf32, #tpu.memory_space<vmem>>, vector<2x256xf32>,
    } else {
    }
    %c0 = arith.constant 0 : index
    %c0_1 = arith.constant 0 : index
    %c0_2 = arith.constant 0 : index
    %3 = vector.load %arg2[%c0, %c0_1, %c0_2] : memref<2x1x256xf32, #tpu.memory_space<vmem>>, vector<2x1x256xf32>
    %c0_3 = arith.constant 0 : index
    %c0_4 = arith.constant 0 : index
    %4 = vector.load %arg3[%c0_3, %c0_4] : memref<2x256xf32, #tpu.memory_space<vmem>>, vector<2x256xf32>
    %cst = arith.constant dense<0.000000e+00> : vector<2x256xf32>
    %5 = vector.multi_reduction <add>, %3, %cst [1] : vector<2x1x256xf32> to vector<2x256xf32>
    %6 = arith.addf %4, %5 : vector<2x256xf32>
    %c0_5 = arith.constant 0 : index
    %c0_6 = arith.constant 0 : index
    %7 = vector.load %arg3[%c0_5, %c0_6] : memref<2x256xf32, #tpu.memory_space<vmem>>, vector<2x256xf32>
    tpu.vector_store %arg3[%c0_5, %c0_6], %6 {strides = array<i32>} : memref<2x256xf32, #tpu.memory_space<vmem>>, vector<2x256xf32>,
    %c0_7 = arith.constant 0 : index
    %c0_8 = arith.constant 0 : index
    %8 = vector.load %arg4[%c0_7, %c0_8] : memref<2x256xf32, #tpu.memory_space<vmem>>, vector<2x256xf32>
    %9 = arith.mulf %3, %3 : vector<2x1x256xf32>
    %cst_9 = arith.constant dense<0.000000e+00> : vector<2x256xf32>
    %10 = vector.multi_reduction <add>, %9, %cst_9 [1] : vector<2x1x256xf32> to vector<2x256xf32>
    %11 = arith.addf %8, %10 : vector<2x256xf32>
    %c0_10 = arith.constant 0 : index
    %c0_11 = arith.constant 0 : index
    %12 = vector.load %arg4[%c0_10, %c0_11] : memref<2x256xf32, #tpu.memory_space<vmem>>, vector<2x256xf32>
    tpu.vector_store %arg4[%c0_10, %c0_11], %11 {strides = array<i32>} : memref<2x256xf32, #tpu.memory_space<vmem>>, vector<2x256xf32>,
    %c0_12 = arith.constant 0 : index
    %c0_13 = arith.constant 0 : index
    %13 = vector.load %arg5[%c0_12, %c0_13] : memref<2x256xf32, #tpu.memory_space<vmem>>, vector<2x256xf32>
    %cst_14 = arith.constant dense<0x7F800000> : vector<2x256xf32>
    %14 = vector.multi_reduction <minimumf>, %3, %cst_14 [1] : vector<2x1x256xf32> to vector<2x256xf32>
    %15 = arith.minimumf %13, %14 : vector<2x256xf32>
    %c0_15 = arith.constant 0 : index
    %c0_16 = arith.constant 0 : index
    %16 = vector.load %arg5[%c0_15, %c0_16] : memref<2x256xf32, #tpu.memory_space<vmem>>, vector<2x256xf32>
    tpu.vector_store %arg5[%c0_15, %c0_16], %15 {strides = array<i32>} : memref<2x256xf32, #tpu.memory_space<vmem>>, vector<2x256xf32>,
    %c0_17 = arith.constant 0 : index
    %c0_18 = arith.constant 0 : index
    %17 = vector.load %arg6[%c0_17, %c0_18] : memref<2x256xf32, #tpu.memory_space<vmem>>, vector<2x256xf32>
    %cst_19 = arith.constant dense<0xFF800000> : vector<2x256xf32>
    %18 = vector.multi_reduction <maximumf>, %3, %cst_19 [1] : vector<2x1x256xf32> to vector<2x256xf32>
    %19 = arith.maximumf %17, %18 : vector<2x256xf32>
    %c0_20 = arith.constant 0 : index
    %c0_21 = arith.constant 0 : index
    %20 = vector.load %arg6[%c0_20, %c0_21] : memref<2x256xf32, #tpu.memory_space<vmem>>, vector<2x256xf32>
    tpu.vector_store %arg6[%c0_20, %c0_21], %19 {strides = array<i32>} : memref<2x256xf32, #tpu.memory_space<vmem>>, vector<2x256xf32>,
    return
  }
  func.func @transform_0(%arg0: i32, %arg1: i32) -> (i32, i32, i32) {
    %c0_i32 = arith.constant 0 : i32
    %c0_i32_0 = arith.constant 0 : i32
    return %arg0, %arg1, %c0_i32 : i32, i32, i32
  }
  func.func @transform_1(%arg0: i32, %arg1: i32) -> (i32, i32) {
    %c0_i32 = arith.constant 0 : i32
    %c0_i32_0 = arith.constant 0 : i32
    return %arg0, %c0_i32 : i32, i32
  }
  func.func @transform_2(%arg0: i32, %arg1: i32) -> (i32, i32) {
    %c0_i32 = arith.constant 0 : i32
    %c0_i32_0 = arith.constant 0 : i32
    return %arg0, %c0_i32 : i32, i32
  }
  func.func @transform_3(%arg0: i32, %arg1: i32) -> (i32, i32) {
    %c0_i32 = arith.constant 0 : i32
    %c0_i32_0 = arith.constant 0 : i32
    return %arg0, %c0_i32 : i32, i32
  }
  func.func @transform_4(%arg0: i32, %arg1: i32) -> (i32, i32) {
    %c0_i32 = arith.constant 0 : i32
    %c0_i32_0 = arith.constant 0 : i32
    return %arg0, %c0_i32 : i32, i32
  }
}

</mosaic_0001>

<bundles_post_ra>
// kernel: tpu_custom_call.1
= control target key start
LH: loop header
LB: loop body
LE: loop exit
PB: predicated region body
PF: predicated region fallthrough
CT: control target
= control target key end

     0   :  { %10 = vsyncpa [#allocation3], 0  ;;  %s323_s0 = inlined_call_operand.hbm [shape: f32[2,1,256], index: 0, kind: input, shape index: {}]   ;;  %s324_s1 = inlined_call_operand.hbm [shape: f32[2,256], index: 1, kind: output, shape index: {0}]   ;;  %s325_s2 = inlined_call_operand.hbm [shape: f32[2,256], index: 2, kind: output, shape index: {1}]   ;;  %s326_s3 = inlined_call_operand.hbm [shape: f32[2,256], index: 3, kind: output, shape index: {2}]   ;;  %s327_s4 = inlined_call_operand.hbm [shape: f32[2,256], index: 4, kind: output, shape index: {3}]  }
   0x1   :  { %11 = vsyncpa [#allocation4], 0 }
   0x2   :  { %12 = vsyncpa [#allocation7], 0 }
   0x3   :  { %13 = vsyncpa [#allocation10], 0  ;;  %s265_s15 = smov [#allocation2]  }
   0x4   :  { %s19_s16 = sshll.u32 %s265_s15, 4  ;;  %s20_s16 = int_to_ptr.vmem [resolvable:$true] %s19_s16 }
   0x5   :  { %s165_s17 = scalar_lea.vmem %s20_s16, 64  ;;  %p170_p1 = scmp.lt.s32.totalorder %s20_s16, %s20_s16 }
   0x6   :  { %p166_p0 = scmp.ne.s32.totalorder %s20_s16, %s165_s17  ;;  %p171_p2 = scmp.lt.s32.totalorder %s165_s17, %s165_s17 }
   0x8   :  { %p172_p3 = por %p171_p2, %p170_p1 }
   0xa   :  { %p173_p4 = pnand %p172_p3, %p166_p0 }
   0xc   :  { %176 = shalt.err (!%p173_p4)
}
   0xd   :  { %s266_s18 = smov 32   ;;  %s267_s19 = smov 2  }
   0xe   :  { %25 = dma.hbm_to_vmem [thread:$0]  %s323_s0, 64, %s20_s16, [#allocation3], %s266_s18, %s266_s18, %s267_s19  }
   0xf   :  { %257 = dma.done.wait [#allocation3], 64  }
  0x10   :  { %258 = vsyncadd [#allocation3], 4294967232  ;;  %v48_v0 = vlaneseq  ;;  %v268_v1 = vmov 0.0   ;;  %v269_v2 = vmov inf   ;;  %v270_v3 = vmov -inf   ;;  %s272_s0 = smov [#allocation5]  }
  0x11   :  { %34 = vst [vmem:[#allocation6] sm:$0xf] %v268_v1  ;;  %33 = vst [vmem:[#allocation5] sm:$0xf] %v268_v1  ;;  %v271_v4 = vmov 1935823168  }
  0x12   :  { %35 = vst [vmem:[#allocation8] sm:$0xf] %v269_v2  ;;  %36 = vst [vmem:[#allocation9] sm:$0xf] %v270_v3  ;;  %v46_v5 = vunpack.c.l.s4 %v271_v4  ;;  %v49_v6 = vshrl.u32 %v48_v0, 7  ;;  %s96_s22 = sshll.u32 %s272_s0, 4  ;;  %s97_s22 = int_to_ptr.vmem [resolvable:$true] %s96_s22 }
  0x13   :  { %v37_v9 = vld [vmem:[#allocation2] sm:$0x3]  ;;  %v38_v10 = vld [vmem:[#allocation2 + $0x2] sm:$0x3]  ;;  %s273_s23 = smov [#allocation9]   ;;  %s274_s25 = smov [#allocation6]  }
  0x14   :  { %v47_v7 = vunpack.c.0.s8 %v46_v5  ;;  %v56_v11 = vmul.f32 %v37_v9, %v37_v9  ;;  %v57_v12 = vmul.f32 %v38_v10, %v38_v10  ;;  %v44_v13 = vcombine.low %v37_v9, %v38_v10  ;;  %s126_s24 = sshll.u32 %s273_s23, 4  ;;  %s106_s26 = sshll.u32 %s274_s25, 4  ;;  %s127_s24 = int_to_ptr.vmem [resolvable:$true] %s126_s24  ;;  %s107_s26 = int_to_ptr.vmem [resolvable:$true] %s106_s26 }
  0x15   :  { %s275_s27 = smov [#allocation8]   ;;  %s177_s29 = scalar_lea.vmem %s97_s22, 64 }
  0x16   :  { %v50_v8 = vsub.s32 %v47_v7, %v49_v6  ;;  %v62_v17 = vcombine.low %v56_v11, %v57_v12  ;;  %s116_s28 = sshll.u32 %s275_s27, 4  ;;  %p178_p5 = scmp.ne.s32.totalorder %s97_s22, %s177_s29  ;;  %s304_s28 = int_to_ptr.vmem [resolvable:$true] %s116_s28 }
  0x17   :  { %p182_p6 = scmp.lt.s32.totalorder %s97_s22, %s97_s22  ;;  %p183_p7 = scmp.lt.s32.totalorder %s177_s29, %s177_s29 }
  0x18   :  { %v39_v14 = vld [vmem:[#allocation5] sm:$0xf]  ;;  %v51_v18 = vrot.slane %v44_v13, %v50_v8  ;;  %v55_v19 = vld [vmem:[#allocation6] sm:$0xf]  ;;  %v69_v20 = vrot.slane %v62_v17, %v50_v8 }
  0x19   :  { %v73_v15 = vld [vmem:[#allocation8] sm:$0xf]  ;;  %v87_v16 = vld [vmem:[#allocation9] sm:$0xf]  ;;  %p184_p8 = por %p183_p7, %p182_p6 }
  0x1a   :  { %v53_v21 = vadd.f32 %v51_v18, %v39_v14  ;;  %v85_v22 = vmin.f32 %v73_v15, %v51_v18  ;;  %v88_v23 = vmax.f32 %v87_v16, %v51_v18  ;;  %v71_v24 = vadd.f32 %v69_v20, %v55_v19 }
  0x1b   :  { %p185_p9 = pnand %p184_p8, %p178_p5 }
  0x1c   :  { %54 = vst [vmem:[#allocation5] sm:$0xf] %v53_v21  ;;  %86 = vst [vmem:[#allocation8] sm:$0xf] %v85_v22 }
  0x1d   :  { %89 = vst [vmem:[#allocation9] sm:$0xf] %v88_v23 }
  0x1e   :  { %188 = shalt.err (!%p185_p9)
}
  0x1f   :  { %99 = dma.vmem_to_hbm [thread:$0]  %s97_s22, 64, %s324_s1, [#allocation4]   ;;  %72 = vst [vmem:[#allocation6] sm:$0xf] %v71_v24 }
  0x20   :  { %s197_s6 = scalar_lea.vmem %s127_s24, 64  ;;  %p202_p11 = scmp.lt.s32.totalorder %s127_s24, %s127_s24 }
  0x21   :  { %p198_p10 = scmp.ne.s32.totalorder %s127_s24, %s197_s6  ;;  %p203_p12 = scmp.lt.s32.totalorder %s197_s6, %s197_s6 }
  0x23   :  { %p204_p13 = por %p203_p12, %p202_p11 }
  0x25   :  { %p205_p0 = pnand %p204_p13, %p198_p10 }
  0x27   :  { %208 = shalt.err (!%p205_p0)
}
  0x28   :  { %129 = dma.vmem_to_hbm [thread:$0]  %s127_s24, 64, %s327_s4, [#allocation10]  }
  0x29   :  { %s217_s9 = scalar_lea.vmem %s107_s26, 64  ;;  %p222_p2 = scmp.lt.s32.totalorder %s107_s26, %s107_s26 }
  0x2a   :  { %p218_p1 = scmp.ne.s32.totalorder %s107_s26, %s217_s9  ;;  %p223_p3 = scmp.lt.s32.totalorder %s217_s9, %s217_s9 }
  0x2c   :  { %p224_p4 = por %p223_p3, %p222_p2 }
  0x2e   :  { %p225_p5 = pnand %p224_p4, %p218_p1 }
  0x30   :  { %228 = shalt.err (!%p225_p5)
}
  0x31   :  { %109 = dma.vmem_to_hbm [thread:$0]  %s107_s26, 64, %s325_s2, [#allocation7]  }
  0x32   :  { %s237_s11 = scalar_lea.vmem %s304_s28, 64  ;;  %p242_p7 = scmp.lt.s32.totalorder %s304_s28, %s304_s28 }
  0x33   :  { %p238_p6 = scmp.ne.s32.totalorder %s304_s28, %s237_s11  ;;  %p243_p8 = scmp.lt.s32.totalorder %s237_s11, %s237_s11 }
  0x35   :  { %p244_p9 = por %p243_p8, %p242_p7 }
  0x37   :  { %p245_p10 = pnand %p244_p9, %p238_p6 }
  0x39   :  { %248 = shalt.err (!%p245_p10)
}
  0x3a   :  { %119 = dma.vmem_to_hbm [thread:$0]  %s304_s28, 64, %s326_s3, [#allocation7]  }
  0x3b   :  { %259 = dma.done.wait [#allocation4], 64  }
  0x3c   :  { %260 = vsyncadd [#allocation4], 4294967232 }
  0x3d   :  { %261 = dma.done.wait [#allocation7], 128  }
  0x3e   :  { %262 = vsyncadd [#allocation7], 4294967168 }
  0x3f   :  { %263 = dma.done.wait [#allocation10], 64  }
  0x40   :  { %264 = vsyncadd [#allocation10], 4294967232 }
  0x41   :  { %142 = vsyncpa [#allocation3], 1 }
  0x42   :  { %143 = vsyncpa [#allocation4], 1 }
  0x43   :  { %144 = vsyncpa [#allocation7], 1 }
  0x44   :  { %145 = vsyncpa [#allocation10], 1 }

</bundles_post_ra>
